<compile_context>
chip_gen: v5e
topology: v5e:2x2
jax: 0.10.0
libtpu: 0.0.40
codegen_flags: <defaults>
</compile_context>

<pallas_src>
import functools

import jax
import jax.numpy as jnp
from jax.experimental import pallas as pl
from jax.experimental.pallas import tpu as pltpu


def _round_up(x, m):
    return ((x + m - 1) // m) * m


def _kd_loss_kernel(logits_ref, teacher_ref, *rest,
                    alpha, temperature, n_rows, tm, blocks_per_part, need_mask):
    if alpha != 1.0:
        labels_ref, out_ref, acc_ref = rest
    else:
        out_ref, acc_ref = rest

    part = pl.program_id(0)   # megacore partition axis ("parallel")
    i = pl.program_id(1)      # row-block axis within the partition ("arbitrary")

    @pl.when(i == 0)
    def _init():
        acc_ref[...] = jnp.zeros_like(acc_ref)

    x = logits_ref[...].astype(jnp.float32)
    t = teacher_ref[...].astype(jnp.float32)

    if temperature != 1.0:
        inv_temp = 1.0 / temperature
        a = x * inv_temp
        b = t * inv_temp
    else:
        a, b = x, t

    # sigmoid via a single EUP op: sigmoid(z) = 0.5*tanh(0.5*z) + 0.5
    p = 0.5 * jnp.tanh(0.5 * a) + 0.5
    # Binary KL( sigmoid(a) || sigmoid(b) ), elementwise, in stable softplus form:
    #   p*log(p/q) + (1-p)*log((1-p)/(1-q)) = sigmoid(a)*(a-b) - softplus(a) + softplus(b)
    kl = p * (a - b) - jax.nn.softplus(a) + jax.nn.softplus(b)

    if alpha != 1.0:
        y = labels_ref[...].astype(jnp.float32)
        ps = p if temperature == 1.0 else 0.5 * jnp.tanh(0.5 * x) + 0.5
        # Spec: elem = -sigmoid(x)*log(y) - (1 - sigmoid(x))*log(1 - y)
        bce = -ps * jnp.log(y) - (1.0 - ps) * jnp.log(1.0 - y)
        tile = (alpha * temperature ** 2) * kl + (1.0 - alpha) * bce
    else:
        tile = kl

    # Lane-parallel partial sum into the (1, C) accumulator; only the sublane
    # (row) axis is reduced per grid step.  Rows past n_rows (ragged last block
    # or clamped duplicate blocks) are zeroed with a select, gated to run only
    # on the blocks that actually overlap the boundary.
    if need_mask:
        row0 = (part * blocks_per_part + i) * tm

        @pl.when(row0 + tm > n_rows)
        def _ragged():
            c = tile.shape[1]
            rows = jax.lax.broadcasted_iota(jnp.int32, (tm, c), 0) + row0
            acc_ref[...] += jnp.sum(jnp.where(rows < n_rows, tile, 0.0),
                                    axis=0, keepdims=True)

        @pl.when(row0 + tm <= n_rows)
        def _full():
            acc_ref[...] += jnp.sum(tile, axis=0, keepdims=True)
    else:
        acc_ref[...] += jnp.sum(tile, axis=0, keepdims=True)

    @pl.when(i == pl.num_programs(1) - 1)
    def _finalize():
        partial = jnp.sum(acc_ref[...], axis=1, keepdims=True) * (1.0 / n_rows)
        out_ref[...] = partial.reshape(out_ref.shape)


class KDLoss:
    """Pallas-TPU implementation of the PyTorch KDLoss module (forward pass)."""

    def __init__(self, alpha: float = 1.0, temperature: float = 1.0,
                 max_tile_rows: int = 4096):
        assert 0.0 <= alpha <= 1.0, "alpha must be between 0 and 1"
        self.alpha = float(alpha)
        self.temperature = float(temperature)
        self.max_tile_rows = int(max_tile_rows)   # tuning knob / test hook

    def __call__(self, logits, teacher_logits, labels=None):
        assert logits.ndim == 2 and logits.shape == teacher_logits.shape
        n, c = logits.shape
        use_labels = self.alpha != 1.0
        if use_labels:
            assert labels is not None, "labels cannot be None for alpha lower than one"
            assert labels.shape == logits.shape
            inputs = (logits, teacher_logits, labels)
        else:
            inputs = (logits, teacher_logits)
        n_inputs = len(inputs)

        # ---- generation-aware VMEM budget (v7x has 64 MiB/TC, v5e/v6e 128 MiB)
        try:
            vmem_cap = int(pltpu.get_tpu_info().vmem_capacity_bytes)
        except Exception:  # pragma: no cover - conservative fallback
            vmem_cap = 64 * 1024 * 1024
        tile_budget = (vmem_cap * 11) // 20          # ~55% of VMEM for input tiles

        c_lanes = _round_up(c, 128)                  # lane-padded width in VMEM
        bytes_per_row = sum(c_lanes * x.dtype.itemsize for x in inputs)
        tm_budget = tile_budget // (2 * bytes_per_row)   # double-buffered inputs
        tm_budget = max(16, (tm_budget // 16) * 16)
        tm = min(tm_budget, max(16, self.max_tile_rows), _round_up(n, 16))

        total_blocks = pl.cdiv(n, tm)
        num_parts = 2 if total_blocks >= 2 else 1     # both v7x TensorCores
        blocks_per_part = pl.cdiv(total_blocks, num_parts)
        need_mask = (n % tm != 0) or (blocks_per_part * num_parts != total_blocks)

        def row_block(p, i):
            gb = p * blocks_per_part + i
            # Clamp so a partition's trailing (empty) block re-reads the last
            # valid block; its rows are >= n and get fully masked in-kernel.
            return (jnp.minimum(gb, total_blocks - 1), 0)

        # Deeper pipelining only when a huge C pins tm to the minimum tile.
        triple_buffer = (tm_budget <= 16) and (blocks_per_part >= 3)
        if triple_buffer:
            row_spec = pl.BlockSpec((tm, c), row_block, pipeline_mode=pl.Buffered(3))
            nbuf = 3
        else:
            row_spec = pl.BlockSpec((tm, c), row_block)
            nbuf = 2

        resident = nbuf * sum(tm * c_lanes * x.dtype.itemsize for x in inputs)
        vmem_limit = int(min(vmem_cap * 9 // 10,
                             max(32 * 1024 * 1024, resident + (8 << 20))))

        kernel = functools.partial(
            _kd_loss_kernel,
            alpha=self.alpha,
            temperature=self.temperature,
            n_rows=n,
            tm=tm,
            blocks_per_part=blocks_per_part,
            need_mask=need_mask,
        )

        out = pl.pallas_call(
            kernel,
            out_shape=jax.ShapeDtypeStruct((num_parts, 1, 1), jnp.float32),
            grid_spec=pltpu.PrefetchScalarGridSpec(
                num_scalar_prefetch=0,
                grid=(num_parts, blocks_per_part),
                in_specs=[row_spec] * n_inputs,
                out_specs=pl.BlockSpec((1, 1, 1), lambda p, i: (p, 0, 0)),
                scratch_shapes=[pltpu.VMEM((1, c), jnp.float32)],
            ),
            compiler_params=pltpu.CompilerParams(
                dimension_semantics=("parallel", "arbitrary"),
                vmem_limit_bytes=vmem_limit,
            ),
        )(*inputs)

        # Each partition's partial is already divided by n; sum the partials.
        return jnp.sum(out)


# ------------------------- pure-JAX reference -------------------------------
def _binary_cross_entropy_ref(p, q):
    return jnp.mean(jnp.sum(-p * jnp.log(q) - (1 - p) * jnp.log(1 - q), axis=1))


def _binary_kl_divergence_ref(p, q):
    return jnp.mean(
        jnp.sum(p * jnp.log(p / q) + (1 - p) * jnp.log((1 - p) / (1 - q)), axis=-1)
    )


def _kd_loss_ref(logits, teacher_logits, labels, alpha, temperature):
    teacher_loss = _binary_kl_divergence_ref(
        jax.nn.sigmoid(logits / temperature),
        jax.nn.sigmoid(teacher_logits / temperature),
    )
    if alpha == 1.0:
        return teacher_loss
    labels_loss = _binary_cross_entropy_ref(jax.nn.sigmoid(logits), labels)
    return alpha * temperature ** 2 * teacher_loss + labels_loss * (1 - alpha)


if __name__ == "__main__":
    key = jax.random.PRNGKey(0)
    ks = jax.random.split(key, 11)

    # ---- Case 1 & 2: aligned shapes ---------------------------------------
    N, C = 16, 128
    logits = jax.random.normal(ks[0], (N, C), dtype=jnp.float32)
    teacher = jax.random.normal(ks[1], (N, C), dtype=jnp.float32)
    # labels must lie strictly inside (0,1): the spec takes log(labels)/log(1-labels).
    labels = jax.random.uniform(ks[2], (N, C), minval=0.05, maxval=0.95, dtype=jnp.float32)

    loss_a1 = KDLoss(alpha=1.0, temperature=1.0)(logits, teacher)
    ref_a1 = _kd_loss_ref(logits, teacher, None, 1.0, 1.0)

    loss_mix = KDLoss(alpha=0.5, temperature=2.0)(logits, teacher, labels)
    ref_mix = _kd_loss_ref(logits, teacher, labels, 0.5, 2.0)

    # ---- Case 3: unaligned shapes (ragged block, no wrapper-side padding) --
    N2, C2 = 13, 100
    l2 = jax.random.normal(ks[3], (N2, C2), dtype=jnp.float32)
    t2 = jax.random.normal(ks[4], (N2, C2), dtype=jnp.float32)
    y2 = jax.random.uniform(ks[5], (N2, C2), minval=0.05, maxval=0.95, dtype=jnp.float32)
    loss_rag = KDLoss(alpha=0.7, temperature=1.5)(l2, t2, y2)
    ref_rag = _kd_loss_ref(l2, t2, y2, 0.7, 1.5)

    # ---- Case 4: multi-block + 2-way megacore partition (forced small tile)
    N3, C3 = 100, 128
    l3 = jax.random.normal(ks[6], (N3, C3), dtype=jnp.float32)
    t3 = jax.random.normal(ks[7], (N3, C3), dtype=jnp.float32)
    y3 = jax.random.uniform(ks[8], (N3, C3), minval=0.05, maxval=0.95, dtype=jnp.float32)
    loss_mc = KDLoss(alpha=0.3, temperature=3.0, max_tile_rows=32)(l3, t3, y3)
    ref_mc = _kd_loss_ref(l3, t3, y3, 0.3, 3.0)

    # ---- Case 5: odd block count -> exercises the clamped, fully-masked block
    N4 = 80
    l4 = jax.random.normal(ks[9], (N4, C3), dtype=jnp.float32)
    t4 = jax.random.normal(ks[10], (N4, C3), dtype=jnp.float32)
    loss_odd = KDLoss(alpha=1.0, temperature=2.0, max_tile_rows=32)(l4, t4)
    ref_odd = _kd_loss_ref(l4, t4, None, 1.0, 2.0)

    # ---- Case 6: bf16 inputs (half the HBM bytes; f32 accumulation in-kernel)
    lb = logits.astype(jnp.bfloat16)
    tb = teacher.astype(jnp.bfloat16)
    loss_bf16 = KDLoss(alpha=1.0, temperature=1.0)(lb, tb)
    ref_bf16 = _kd_loss_ref(lb.astype(jnp.float32), tb.astype(jnp.float32), None, 1.0, 1.0)

    jax.block_until_ready((loss_a1, loss_mix, loss_rag, loss_mc, loss_odd, loss_bf16))

    for got, want in [(loss_a1, ref_a1), (loss_mix, ref_mix), (loss_rag, ref_rag),
                      (loss_mc, ref_mc), (loss_odd, ref_odd), (loss_bf16, ref_bf16)]:
        assert jnp.allclose(got, want, rtol=1e-4, atol=1e-4), (got, want)

    print("KERNEL_OK")
</pallas_src>

<mosaic_0001>
module attributes {stable_mosaic.version = 11 : i64} {
  func.func @_kd_loss_kernel(%arg0: i32, %arg1: i32, %arg2: memref<16x128xf32, #tpu.memory_space<vmem>>, %arg3: memref<16x128xf32, #tpu.memory_space<vmem>>, %arg4: memref<1x1x1xf32, #tpu.memory_space<vmem>>, %arg5: memref<1x128xf32, #tpu.memory_space<vmem>>) attributes {dimension_semantics = [#tpu.dimension_semantics<parallel>, #tpu.dimension_semantics<arbitrary>], iteration_bounds = array<i64: 1, 1>, scalar_prefetch = 0 : i64, scratch_operands = 1 : i64, tpu.core_type = #tpu.core_type<tc>, window_params = [{transform_indices = @transform_0, window_bounds = array<i64: 16, 128>}, {transform_indices = @transform_1, window_bounds = array<i64: 16, 128>}, {transform_indices = @transform_2, window_bounds = array<i64: 1, 1, 1>}]} {
    %c0_i32 = arith.constant 0 : i32
    %0 = arith.cmpi eq, %arg1, %c0_i32 : i32
    %1 = arith.extui %0 : i1 to i32
    %c0_i32_0 = arith.constant 0 : i32
    %2 = arith.cmpi ne, %1, %c0_i32_0 : i32
    scf.if %2 {
      %cst_17 = arith.constant 0.000000e+00 : f32
      %52 = vector.broadcast %cst_17 : f32 to vector<1x128xf32>
      %c0_18 = arith.constant 0 : index
      %c0_19 = arith.constant 0 : index
      %53 = vector.load %arg5[%c0_18, %c0_19] : memref<1x128xf32, #tpu.memory_space<vmem>>, vector<1x128xf32>
      tpu.vector_store %arg5[%c0_18, %c0_19], %52 {strides = array<i32>} : memref<1x128xf32, #tpu.memory_space<vmem>>, vector<1x128xf32>,
    } else {
    }
    %c0 = arith.constant 0 : index
    %c0_1 = arith.constant 0 : index
    %3 = vector.load %arg2[%c0, %c0_1] : memref<16x128xf32, #tpu.memory_space<vmem>>, vector<16x128xf32>
    %c0_2 = arith.constant 0 : index
    %c0_3 = arith.constant 0 : index
    %4 = vector.load %arg3[%c0_2, %c0_3] : memref<16x128xf32, #tpu.memory_space<vmem>>, vector<16x128xf32>
    %cst = arith.constant 5.000000e-01 : f32
    %5 = vector.broadcast %cst : f32 to vector<16x128xf32>
    %6 = arith.mulf %5, %3 : vector<16x128xf32>
    %7 = math.tanh %6 : vector<16x128xf32>
    %cst_4 = arith.constant 5.000000e-01 : f32
    %8 = vector.broadcast %cst_4 : f32 to vector<16x128xf32>
    %9 = arith.mulf %8, %7 : vector<16x128xf32>
    %cst_5 = arith.constant 5.000000e-01 : f32
    %10 = vector.broadcast %cst_5 : f32 to vector<16x128xf32>
    %11 = arith.addf %9, %10 : vector<16x128xf32>
    %12 = arith.subf %3, %4 : vector<16x128xf32>
    %13 = arith.mulf %11, %12 : vector<16x128xf32>
    %cst_6 = arith.constant 0.000000e+00 : f32
    %14 = vector.broadcast %cst_6 : f32 to vector<16x128xf32>
    %15 = arith.maximumf %3, %14 : vector<16x128xf32>
    %16 = vector.broadcast %cst_6 : f32 to vector<16x128xf32>
    %17 = arith.subf %3, %16 : vector<16x128xf32>
    %18 = arith.cmpf one, %17, %17 : vector<16x128xf32>
    %19 = vector.broadcast %cst_6 : f32 to vector<16x128xf32>
    %20 = arith.addf %3, %19 : vector<16x128xf32>
    %21 = math.absf %17 : vector<16x128xf32>
    %cst_7 = arith.constant 0.000000e+00 : f32
    %22 = vector.broadcast %cst_7 : f32 to vector<16x128xf32>
    %23 = arith.subf %22, %21 : vector<16x128xf32>
    %24 = math.exp %23 : vector<16x128xf32>
    %25 = math.log1p %24 : vector<16x128xf32>
    %26 = arith.addf %15, %25 : vector<16x128xf32>
    %27 = arith.select %18, %20, %26 : vector<16x128xi1>, vector<16x128xf32>
    %28 = arith.subf %13, %27 : vector<16x128xf32>
    %cst_8 = arith.constant 0.000000e+00 : f32
    %29 = vector.broadcast %cst_8 : f32 to vector<16x128xf32>
    %30 = arith.maximumf %4, %29 : vector<16x128xf32>
    %31 = vector.broadcast %cst_8 : f32 to vector<16x128xf32>
    %32 = arith.subf %4, %31 : vector<16x128xf32>
    %33 = arith.cmpf one, %32, %32 : vector<16x128xf32>
    %34 = vector.broadcast %cst_8 : f32 to vector<16x128xf32>
    %35 = arith.addf %4, %34 : vector<16x128xf32>
    %36 = math.absf %32 : vector<16x128xf32>
    %cst_9 = arith.constant 0.000000e+00 : f32
    %37 = vector.broadcast %cst_9 : f32 to vector<16x128xf32>
    %38 = arith.subf %37, %36 : vector<16x128xf32>
    %39 = math.exp %38 : vector<16x128xf32>
    %40 = math.log1p %39 : vector<16x128xf32>
    %41 = arith.addf %30, %40 : vector<16x128xf32>
    %42 = arith.select %33, %35, %41 : vector<16x128xi1>, vector<16x128xf32>
    %43 = arith.addf %28, %42 : vector<16x128xf32>
    %c0_10 = arith.constant 0 : index
    %c0_11 = arith.constant 0 : index
    %44 = vector.load %arg5[%c0_10, %c0_11] : memref<1x128xf32, #tpu.memory_space<vmem>>, vector<1x128xf32>
    %cst_12 = arith.constant dense<0.000000e+00> : vector<128xf32>
    %45 = vector.multi_reduction <add>, %43, %cst_12 [0] : vector<16x128xf32> to vector<128xf32>
    %46 = vector.shape_cast %45 : vector<128xf32> to vector<1x128xf32>
    %47 = arith.addf %44, %46 : vector<1x128xf32>
    %c0_13 = arith.constant 0 : index
    %c0_14 = arith.constant 0 : index
    %48 = vector.load %arg5[%c0_13, %c0_14] : memref<1x128xf32, #tpu.memory_space<vmem>>, vector<1x128xf32>
    tpu.vector_store %arg5[%c0_13, %c0_14], %47 {strides = array<i32>} : memref<1x128xf32, #tpu.memory_space<vmem>>, vector<1x128xf32>,
    %c0_i32_15 = arith.constant 0 : i32
    %49 = arith.cmpi eq, %arg1, %c0_i32_15 : i32
    %50 = arith.extui %49 : i1 to i32
    %c0_i32_16 = arith.constant 0 : i32
    %51 = arith.cmpi ne, %50, %c0_i32_16 : i32
    scf.if %51 {
      %c0_17 = arith.constant 0 : index
      %c0_18 = arith.constant 0 : index
      %52 = vector.load %arg5[%c0_17, %c0_18] : memref<1x128xf32, #tpu.memory_space<vmem>>, vector<1x128xf32>
      %cst_19 = arith.constant dense<0.000000e+00> : vector<1xf32>
      %53 = vector.multi_reduction <add>, %52, %cst_19 [1] : vector<1x128xf32> to vector<1xf32>
      %54 = vector.shape_cast %53 : vector<1xf32> to vector<1x1xf32>
      %cst_20 = arith.constant 6.250000e-02 : f32
      %55 = vector.broadcast %cst_20 : f32 to vector<1x1xf32>
      %56 = arith.mulf %54, %55 : vector<1x1xf32>
      %57 = vector.shape_cast %56 : vector<1x1xf32> to vector<1x1x1xf32>
      %c0_21 = arith.constant 0 : index
      %c0_22 = arith.constant 0 : index
      %c0_23 = arith.constant 0 : index
      %58 = vector.load %arg4[%c0_21, %c0_22, %c0_23] : memref<1x1x1xf32, #tpu.memory_space<vmem>>, vector<1x1x1xf32>
      tpu.vector_store %arg4[%c0_21, %c0_22, %c0_23], %57 {strides = array<i32>} : memref<1x1x1xf32, #tpu.memory_space<vmem>>, vector<1x1x1xf32>,
    } else {
    }
    return
  }
  func.func @transform_0(%arg0: i32, %arg1: i32) -> (i32, i32) {
    %c1_i32 = arith.constant 1 : i32
    %0 = arith.muli %arg0, %c1_i32 : i32
    %1 = arith.addi %0, %arg1 : i32
    %c0_i32 = arith.constant 0 : i32
    %2 = arith.minsi %1, %c0_i32 : i32
    %c0_i32_0 = arith.constant 0 : i32
    %c0_i32_1 = arith.constant 0 : i32
    return %2, %c0_i32_0 : i32, i32
  }
  func.func @transform_1(%arg0: i32, %arg1: i32) -> (i32, i32) {
    %c1_i32 = arith.constant 1 : i32
    %0 = arith.muli %arg0, %c1_i32 : i32
    %1 = arith.addi %0, %arg1 : i32
    %c0_i32 = arith.constant 0 : i32
    %2 = arith.minsi %1, %c0_i32 : i32
    %c0_i32_0 = arith.constant 0 : i32
    %c0_i32_1 = arith.constant 0 : i32
    return %2, %c0_i32_0 : i32, i32
  }
  func.func @transform_2(%arg0: i32, %arg1: i32) -> (i32, i32, i32) {
    %c0_i32 = arith.constant 0 : i32
    %c0_i32_0 = arith.constant 0 : i32
    %c0_i32_1 = arith.constant 0 : i32
    return %arg0, %c0_i32, %c0_i32_0 : i32, i32, i32
  }
}

</mosaic_0001>

<bundles_post_ra>
// kernel: tpu_custom_call.1
= control target key start
LH: loop header
LB: loop body
LE: loop exit
PB: predicated region body
PF: predicated region fallthrough
CT: control target
= control target key end

     0   :  { %7 = vsyncpa [#allocation4], 0  ;;  %s390_s0 = inlined_call_operand.hbm [shape: f32[16,128], index: 0, kind: input, shape index: {}]   ;;  %s391_s1 = inlined_call_operand.hbm [shape: f32[16,128], index: 1, kind: input, shape index: {}]   ;;  %s392_s2 = inlined_call_operand.hbm [shape: f32[1,1,1], index: 2, kind: output, shape index: {}]  }
   0x1   :  { %8 = vsyncpa [#allocation7], 0 }
   0x2   :  { %9 = vsyncpa [#allocation5], 0  ;;  %s20_s11 = sshll.u32 %s390_s0, 4  ;;  %s308_s12 = smov [#allocation3]   ;;  %s21_s11 = int_to_ptr.hbm [resolvable:$true] %s20_s11 }
   0x3   :  { %s22_s13 = sshll.u32 %s308_s12, 4  ;;  %s39_s16 = sshll.u32 %s391_s1, 4  ;;  %s23_s13 = int_to_ptr.vmem [resolvable:$true] %s22_s13  ;;  %s40_s16 = int_to_ptr.hbm [resolvable:$true] %s39_s16 }
   0x4   :  { %s309_s17 = smov 128   ;;  %s310_s18 = smov 8  }
   0x5   :  { %28 = dma.hbm_to_vmem [thread:$0]  %s21_s11, 256, %s23_s13, [#allocation4], %s309_s17, %s309_s17, %s310_s18  }
   0x6   :  { %s311_s19 = smov [#allocation6]  }
   0x7   :  { %s41_s20 = sshll.u32 %s311_s19, 4  ;;  %s42_s20 = int_to_ptr.vmem [resolvable:$true] %s41_s20 }
   0x8   :  { %47 = dma.hbm_to_vmem [thread:$0]  %s40_s16, 256, %s42_s20, [#allocation7], %s309_s17, %s309_s17, %s310_s18  }
   0x9   :  { %302 = dma.done.wait [#allocation4], 256  }
   0xa   :  { %303 = vsyncadd [#allocation4], 4294967040 }
   0xb   :  { %304 = dma.done.wait [#allocation7], 256  }
   0xc   :  { %305 = vsyncadd [#allocation7], 4294967040  ;;  %v312_v0 = vmov 0.0   ;;  %v335_v1 = vld [vmem:[#allocation3] sm:$0xff]  ;;  %v337_v2 = vld [vmem:[#allocation3 + $0x8] sm:$0xff]  ;;  %vm175_vm8 = vcmask 1040384  }
   0xd   :  { %68 = vst [vmem:[#allocation2] sm:$0x1] %v312_v0  ;;  %v339_v3 = vld [vmem:[#allocation6] sm:$0xff]  ;;  %v341_v4 = vld [vmem:[#allocation6 + $0x8] sm:$0xff]  ;;  %v73_v5 = vmul.f32 0.5, %v335_v1  ;;  %v74_v8 = vmul.f32 0.5, %v337_v2  ;;  %vm87_vm0 = vcmp.ne.f32.partialorder %v335_v1, %v335_v1  ;;  %vm88_vm2 = vcmp.ne.f32.partialorder %v337_v2, %v337_v2 }
   0xe   :  { %v91_v6 = vand.u32 2147483647, %v335_v1  ;;  %v92_v7 = vand.u32 2147483647, %v337_v2  ;;  %v129_v11 = vand.u32 2147483647, %v339_v3  ;;  %v81_v30 = vsub.f32 %v335_v1, %v339_v3 }
   0xf   :  { %v130_v12 = vand.u32 2147483647, %v341_v4  ;;  %210 = vtanh.f32 %v73_v5  ;;  %v85_v38 = vmax.f32 %v335_v1, 0.0  ;;  %v82_v42 = vsub.f32 %v337_v2, %v341_v4  ;;  %s313_s0 = smov [#allocation8]   ;;  %s189_s23 = sshll.u32 %s392_s2, 4  ;;  %s190_s23 = int_to_ptr.hbm [resolvable:$true] %s189_s23 }
  0x10   :  { %v93_v9 = vsub.f32 0.0, %v91_v6  ;;  %v94_v10 = vsub.f32 0.0, %v92_v7  ;;  %v131_v15 = vsub.f32 0.0, %v129_v11  ;;  %212 = vtanh.f32 %v74_v8  ;;  %s187_s1 = sshll.u32 %s313_s0, 4  ;;  %s188_s1 = int_to_ptr.vmem [resolvable:$true] %s187_s1 }
  0x11   :  { %v132_v16 = vsub.f32 0.0, %v130_v12  ;;  %v86_v43 = vmax.f32 %v337_v2, 0.0  ;;  %v123_v59 = vmax.f32 %v339_v3, 0.0  ;;  %v124_v60 = vmax.f32 %v341_v4, 0.0 }
  0x12   :  { %v95_v13 = vmul.f32 1.442695, %v93_v9  ;;  %v97_v14 = vmul.f32 1.442695, %v94_v10  ;;  %v133_v17 = vmul.f32 1.442695, %v131_v15  ;;  %vm125_vm6 = vcmp.ne.f32.partialorder %v339_v3, %v339_v3 }
  0x13   :  { %v135_v18 = vmul.f32 1.442695, %v132_v16  ;;  %vm126_vm7 = vcmp.ne.f32.partialorder %v341_v4, %v341_v4  ;;  %vm180_vm9 = vcmask 0  }
  0x14   :  { %214 = vpow2.f32 %v95_v13 }
  0x15   :  { %216 = vpow2.f32 %v97_v14  ;;  %v211_v19 = vpop.eup %210 }
  0x16   :  { %218 = vpow2.f32 %v133_v17  ;;  %v213_v20 = vpop.eup %212  ;;  %v77_v29 = vmul.f32 0.5, %v211_v19 }
  0x17   :  { %220 = vpow2.f32 %v135_v18  ;;  %v78_v32 = vmul.f32 0.5, %v213_v20 }
  0x18   :  { %v79_v45 = vadd.f32 0.5, %v77_v29 }
  0x19   :  { %v80_v49 = vadd.f32 0.5, %v78_v32 }
  0x1a   :  { %v215_v21 = vpop.eup %214  ;;  %v83_v61 = vmul.f32 %v81_v30, %v79_v45 }
  0x1b   :  { %v217_v22 = vpop.eup %216  ;;  %v99_v23 = vadd.f32 1.0, %v215_v21  ;;  %v102_v24 = vmul.f32 -0.5, %v215_v21  ;;  %v105_v35 = vand.u32 2147483647, %v215_v21  ;;  %v84_v6 = vmul.f32 %v82_v42, %v80_v49 }
  0x1c   :  { %v219_v25 = vpop.eup %218  ;;  %v108_v26 = vadd.f32 1.0, %v217_v22  ;;  %v111_v27 = vmul.f32 -0.5, %v217_v22  ;;  %v114_v39 = vand.u32 2147483647, %v217_v22 }
  0x1d   :  { %v221_v28 = vpop.eup %220  ;;  %222 = vlog2.f32 %v99_v23  ;;  %v137_v31 = vadd.f32 1.0, %v219_v25  ;;  %v103_v33 = vadd.f32 1.0, %v102_v24  ;;  %v140_v34 = vmul.f32 -0.5, %v219_v25 }
  0x1e   :  { %224 = vlog2.f32 %v108_v26  ;;  %v112_v36 = vadd.f32 1.0, %v111_v27  ;;  %v146_v37 = vadd.f32 1.0, %v221_v28  ;;  %v149_v41 = vmul.f32 -0.5, %v221_v28 }
  0x1f   :  { %226 = vlog2.f32 %v137_v31  ;;  %v141_v40 = vadd.f32 1.0, %v140_v34  ;;  %v143_v44 = vand.u32 2147483647, %v219_v25  ;;  %v104_v46 = vmul.f32 %v215_v21, %v103_v33 }
  0x20   :  { %228 = vlog2.f32 %v146_v37  ;;  %v150_v47 = vadd.f32 1.0, %v149_v41  ;;  %vm357_vm1 = vcmp.lt.f32.partialorder %v105_v35, 0.0004427343  ;;  %v113_v51 = vmul.f32 %v217_v22, %v112_v36 }
  0x21   :  { %v152_v52 = vand.u32 2147483647, %v221_v28  ;;  %vm363_vm3 = vcmp.lt.f32.partialorder %v114_v39, 0.0004427343  ;;  %v142_v56 = vmul.f32 %v219_v25, %v141_v40  ;;  %vm144_vm4 = vcmp.lt.f32.partialorder %v143_v44, 0.0004427343 }
  0x22   :  { %v151_v0 = vmul.f32 %v221_v28, %v150_v47 }
  0x23   :  { %v223_v48 = vpop.eup %222  ;;  %vm153_vm5 = vcmp.lt.f32.partialorder %v152_v52, 0.0004427343 }
  0x24   :  { %v225_v53 = vpop.eup %224  ;;  %v101_v54 = vmul.f32 0.6931472, %v223_v48 }
  0x25   :  { %v227_v57 = vpop.eup %226  ;;  %v110_v58 = vmul.f32 0.6931472, %v225_v53 }
  0x26   :  { %v107_v62 = vsel %vm357_vm1, %v104_v46, %v101_v54  ;;  %v139_v63 = vmul.f32 0.6931472, %v227_v57  ;;  %v229_v5 = vpop.eup %228 }
  0x27   :  { %v116_v7 = vsel %vm363_vm3, %v113_v51, %v110_v58  ;;  %v117_v8 = vadd.f32 %v107_v62, %v85_v38  ;;  %v148_v11 = vmul.f32 0.6931472, %v229_v5 }
  0x28   :  { %v118_v9 = vadd.f32 %v116_v7, %v86_v43  ;;  %v145_v10 = vsel %vm144_vm4, %v142_v56, %v139_v63 }
  0x29   :  { %v119_v12 = vsel %vm87_vm0, %v335_v1, %v117_v8  ;;  %v155_v13 = vadd.f32 %v145_v10, %v123_v59  ;;  %v154_v16 = vsel %vm153_vm5, %v151_v0, %v148_v11 }
  0x2a   :  { %v120_v14 = vsel %vm88_vm2, %v337_v2, %v118_v9  ;;  %v121_v15 = vsub.f32 %v83_v61, %v119_v12  ;;  %v156_v18 = vadd.f32 %v154_v16, %v124_v60  ;;  %v161_v2 = vld [vmem:[#allocation2] sm:$0x1] }
  0x2b   :  { %v122_v17 = vsub.f32 %v84_v6, %v120_v14  ;;  %v157_v19 = vsel %vm125_vm6, %v339_v3, %v155_v13 }
  0x2c   :  { %v159_v20 = vadd.f32 %v157_v19, %v121_v15  ;;  %v158_v21 = vsel %vm126_vm7, %v341_v4, %v156_v18 }
  0x2d   :  { %v160_v22 = vadd.f32 %v158_v21, %v122_v17 }
  0x2f   :  { %v162_v1 = vadd.f32 %v160_v22, %v159_v20 }
  0x31   :  { %v163_v23 = vrot.slane %v162_v1, 4 }
  0x33   :  { %v164_v24 = vadd.f32 %v163_v23, %v162_v1 }
  0x35   :  { %v165_v25 = vrot.slane %v164_v24, 2 }
  0x37   :  { %v166_v26 = vadd.f32 %v165_v25, %v164_v24 }
  0x39   :  { %v167_v27 = vrot.slane %v166_v26, 1 }
  0x3b   :  { %v168_v28 = vadd.f32 %v167_v27, %v166_v26 }
  0x3d   :  { %v169_v29 = vadd.f32 %v168_v28, %v161_v2 }
  0x3f   :  { %170 = vst [vmem:[#allocation2] sm:$0x1] %v169_v29 }
  0x46   :  { %v174_v30 = vld [vmem:[#allocation2] sm:$0x1] }
  0x47   :  { %v176_v31 = vsel %vm175_vm8, %v174_v30, 0.0 }
  0x48   :  { %177 = vadd.xlane.f32.xlu0 %v176_v31 }
  0xbb   :  { %v178_v3 = vpop.xlane.xlu0 %177 }
  0xbc   :  { %v179_v4 = vmul.f32 0.0625, %v178_v3 }
  0xbe   :  { %181 = vst.msk [vmem:[#allocation8] sm:$0x1] %vm180_vm9, %v179_v4 }
  0xbf   :  { %192 = dma.vmem_to_hbm [thread:$0]  %s188_s1, 16, %s190_s23, [#allocation5]  }
  0xc0   :  { %306 = dma.done.wait [#allocation5], 16  }
  0xc1   :  { %307 = vsyncadd [#allocation5], 4294967280 }
  0xc2   :  { %197 = vsyncpa [#allocation4], 1 }
  0xc3   :  { %198 = vsyncpa [#allocation7], 1 }
  0xc4   :  { %199 = vsyncpa [#allocation5], 1 }

</bundles_post_ra>
